<compile_context>
chip_gen: v6e
topology: v6e:2x2x1
jax: 0.10.0
libtpu: 0.0.40
codegen_flags: <defaults>
</compile_context>

<pallas_src>
from functools import partial

import jax
import jax.numpy as jnp
from jax.experimental import pallas as pl
from jax.experimental.pallas import tpu as pltpu


INPUT_SIZE = 100
HIDDEN_SIZE = 256
OUTPUT_SIZE = 128   # nn.Linear(hidden_size, output_size); lane-aligned choice

BATCH_TILE = 1024   # sweep 512/1024/2048; 1024 is safe vs v7x's 32 MiB scoped VMEM
MIN_SPLIT = 256     # below 2*MIN_SPLIT rows, don't force a megacore split


def _round_up(n, m):
    return ((n + m - 1) // m) * m


def _choose_tile(batch):
    tile = min(BATCH_TILE, _round_up(batch, 8))
    # v7x megacore: once the batch is big enough, guarantee >= 2 grid steps so the
    # "parallel" batch axis actually shards across both TensorCores.
    if batch >= 2 * MIN_SPLIT and pl.cdiv(batch, tile) < 2:
        tile = _round_up(pl.cdiv(batch, 2), MIN_SPLIT)
    return tile


def _generator_kernel(x_ref, w1_ref, b1_ref, w2_ref, b2_ref, w3_ref, b3_ref, o_ref):
    # fc1 + ReLU: cast x to bf16 in-kernel (MXU operand), accumulate in f32.
    x16 = x_ref[...].astype(jnp.bfloat16)
    h1 = jnp.dot(x16, w1_ref[...], preferred_element_type=jnp.float32)
    h1 = jnp.maximum(h1 + b1_ref[...], 0.0)
    # fc2 + ReLU
    h2 = jnp.dot(h1.astype(jnp.bfloat16), w2_ref[...],
                 preferred_element_type=jnp.float32)
    h2 = jnp.maximum(h2 + b2_ref[...], 0.0)
    # fc3 + tanh (tanh runs on the EUP slot; effectively free vs the MXU work)
    h3 = jnp.dot(h2.astype(jnp.bfloat16), w3_ref[...],
                 preferred_element_type=jnp.float32)
    o_ref[...] = jnp.tanh(h3 + b3_ref[...]).astype(o_ref.dtype)


@partial(jax.jit, static_argnames=("out_dtype",))
def generator_forward(x, w1, b1, w2, b2, w3, b3, out_dtype=jnp.bfloat16):
    B, in_dim = x.shape
    hid = w1.shape[1]
    out_dim = w3.shape[1]

    tile = _choose_tile(B)
    grid = (pl.cdiv(B, tile),)  # ragged last batch block handled by Pallas

    return pl.pallas_call(
        _generator_kernel,
        out_shape=jax.ShapeDtypeStruct((B, out_dim), out_dtype),
        grid_spec=pltpu.PrefetchScalarGridSpec(
            num_scalar_prefetch=0,
            grid=grid,
            in_specs=[
                # activations: tile over batch, full K (100 == array dim -> legal)
                pl.BlockSpec((tile, in_dim), lambda i: (i, 0)),
                # weights / biases: full blocks, constant index_map (VMEM-resident)
                pl.BlockSpec((in_dim, hid), lambda i: (0, 0)),
                pl.BlockSpec((1, hid), lambda i: (0, 0)),
                pl.BlockSpec((hid, hid), lambda i: (0, 0)),
                pl.BlockSpec((1, hid), lambda i: (0, 0)),
                pl.BlockSpec((hid, out_dim), lambda i: (0, 0)),
                pl.BlockSpec((1, out_dim), lambda i: (0, 0)),
            ],
            out_specs=pl.BlockSpec((tile, out_dim), lambda i: (i, 0)),
        ),
        compiler_params=pltpu.CompilerParams(
            dimension_semantics=("parallel",),
        ),
    )(x, w1, b1, w2, b2, w3, b3)


def init_params(key, input_size, hidden_size, output_size):
    """Deterministic f32 parameter init (nn.Linear shapes, transposed to (in, out))."""
    k1, k2, k3, k4, k5, k6 = jax.random.split(key, 6)

    def lin(kw, kb, fan_in, fan_out):
        bound = 1.0 / jnp.sqrt(fan_in)
        w = jax.random.uniform(kw, (fan_in, fan_out), jnp.float32, -bound, bound)
        b = jax.random.uniform(kb, (1, fan_out), jnp.float32, -bound, bound)
        return w, b

    w1, b1 = lin(k1, k2, input_size, hidden_size)
    w2, b2 = lin(k3, k4, hidden_size, hidden_size)
    w3, b3 = lin(k5, k6, hidden_size, output_size)
    return w1, b1, w2, b2, w3, b3


def prepare_params(params):
    """One-time bf16 cast of the weights (done at init/update time, NOT inside
    the jitted forward, so no per-call convert ops are emitted)."""
    w1, b1, w2, b2, w3, b3 = params
    return (w1.astype(jnp.bfloat16), b1,
            w2.astype(jnp.bfloat16), b2,
            w3.astype(jnp.bfloat16), b3)


def reference_forward(x, w1, b1, w2, b2, w3, b3):
    h1 = jnp.maximum(x @ w1 + b1, 0.0)
    h2 = jnp.maximum(h1 @ w2 + b2, 0.0)
    return jnp.tanh(h2 @ w3 + b3)


if __name__ == "__main__":
    key = jax.random.PRNGKey(0)
    k_params, k_x = jax.random.split(key)

    batch = 16
    params_f32 = init_params(k_params, INPUT_SIZE, HIDDEN_SIZE, OUTPUT_SIZE)
    params = prepare_params(params_f32)                      # bf16 weights, f32 biases
    x = jax.random.normal(k_x, (batch, INPUT_SIZE), jnp.float32)  # latent noise z

    out = generator_forward(x, *params)
    out = jax.block_until_ready(out)

    ref = reference_forward(x, *params_f32)
    assert out.shape == (batch, OUTPUT_SIZE), out.shape
    # bf16 MXU operands + bf16 output vs f32 reference -> loosened tolerance.
    assert jnp.allclose(out.astype(jnp.float32), ref, atol=3e-2, rtol=3e-2), \
        "mismatch vs reference"

    print("KERNEL_OK")
</pallas_src>

<mosaic_0001>
module attributes {stable_mosaic.version = 11 : i64} {
  func.func @_generator_kernel(%arg0: i32, %arg1: memref<16x100xf32, #tpu.memory_space<vmem>>, %arg2: memref<100x256xbf16, #tpu.memory_space<vmem>>, %arg3: memref<1x256xf32, #tpu.memory_space<vmem>>, %arg4: memref<256x256xbf16, #tpu.memory_space<vmem>>, %arg5: memref<1x256xf32, #tpu.memory_space<vmem>>, %arg6: memref<256x128xbf16, #tpu.memory_space<vmem>>, %arg7: memref<1x128xf32, #tpu.memory_space<vmem>>, %arg8: memref<16x128xbf16, #tpu.memory_space<vmem>>) attributes {dimension_semantics = [#tpu.dimension_semantics<parallel>], iteration_bounds = array<i64: 1>, scalar_prefetch = 0 : i64, scratch_operands = 0 : i64, tpu.core_type = #tpu.core_type<tc>, window_params = [{transform_indices = @transform_0, window_bounds = array<i64: 16, 100>}, {pipeline_mode = #tpu.pipeline_mode<synchronous>, transform_indices = @transform_1, window_bounds = array<i64: 100, 256>}, {pipeline_mode = #tpu.pipeline_mode<synchronous>, transform_indices = @transform_2, window_bounds = array<i64: 1, 256>}, {pipeline_mode = #tpu.pipeline_mode<synchronous>, transform_indices = @transform_3, window_bounds = array<i64: 256, 256>}, {pipeline_mode = #tpu.pipeline_mode<synchronous>, transform_indices = @transform_4, window_bounds = array<i64: 1, 256>}, {pipeline_mode = #tpu.pipeline_mode<synchronous>, transform_indices = @transform_5, window_bounds = array<i64: 256, 128>}, {pipeline_mode = #tpu.pipeline_mode<synchronous>, transform_indices = @transform_6, window_bounds = array<i64: 1, 128>}, {transform_indices = @transform_7, window_bounds = array<i64: 16, 128>}]} {
    %c0 = arith.constant 0 : index
    %c0_0 = arith.constant 0 : index
    %0 = vector.load %arg1[%c0, %c0_0] : memref<16x100xf32, #tpu.memory_space<vmem>>, vector<16x100xf32>
    %1 = arith.truncf %0 : vector<16x100xf32> to vector<16x100xbf16>
    %c0_1 = arith.constant 0 : index
    %c0_2 = arith.constant 0 : index
    %2 = vector.load %arg2[%c0_1, %c0_2] : memref<100x256xbf16, #tpu.memory_space<vmem>>, vector<100x256xbf16>
    %cst = arith.constant dense<0.000000e+00> : vector<16x256xf32>
    %3 = tpu.matmul %1, %2, %cst {dimension_numbers = #tpu.dot_dimension_numbers<[1], [0], [0], [1], [0, 0, 1, 1], [], []>} : vector<16x100xbf16>, vector<100x256xbf16>, vector<16x256xf32> -> vector<16x256xf32>
    %c0_3 = arith.constant 0 : index
    %c0_4 = arith.constant 0 : index
    %4 = vector.load %arg3[%c0_3, %c0_4] : memref<1x256xf32, #tpu.memory_space<vmem>>, vector<1x256xf32>
    %5 = vector.broadcast %4 : vector<1x256xf32> to vector<16x256xf32>
    %6 = arith.addf %3, %5 : vector<16x256xf32>
    %cst_5 = arith.constant 0.000000e+00 : f32
    %7 = vector.broadcast %cst_5 : f32 to vector<16x256xf32>
    %8 = arith.maximumf %6, %7 : vector<16x256xf32>
    %9 = arith.truncf %8 : vector<16x256xf32> to vector<16x256xbf16>
    %c0_6 = arith.constant 0 : index
    %c0_7 = arith.constant 0 : index
    %10 = vector.load %arg4[%c0_6, %c0_7] : memref<256x256xbf16, #tpu.memory_space<vmem>>, vector<256x256xbf16>
    %cst_8 = arith.constant dense<0.000000e+00> : vector<16x256xf32>
    %11 = tpu.matmul %9, %10, %cst_8 {dimension_numbers = #tpu.dot_dimension_numbers<[1], [0], [0], [1], [0, 0, 1, 1], [], []>} : vector<16x256xbf16>, vector<256x256xbf16>, vector<16x256xf32> -> vector<16x256xf32>
    %c0_9 = arith.constant 0 : index
    %c0_10 = arith.constant 0 : index
    %12 = vector.load %arg5[%c0_9, %c0_10] : memref<1x256xf32, #tpu.memory_space<vmem>>, vector<1x256xf32>
    %13 = vector.broadcast %12 : vector<1x256xf32> to vector<16x256xf32>
    %14 = arith.addf %11, %13 : vector<16x256xf32>
    %cst_11 = arith.constant 0.000000e+00 : f32
    %15 = vector.broadcast %cst_11 : f32 to vector<16x256xf32>
    %16 = arith.maximumf %14, %15 : vector<16x256xf32>
    %17 = arith.truncf %16 : vector<16x256xf32> to vector<16x256xbf16>
    %c0_12 = arith.constant 0 : index
    %c0_13 = arith.constant 0 : index
    %18 = vector.load %arg6[%c0_12, %c0_13] : memref<256x128xbf16, #tpu.memory_space<vmem>>, vector<256x128xbf16>
    %cst_14 = arith.constant dense<0.000000e+00> : vector<16x128xf32>
    %19 = tpu.matmul %17, %18, %cst_14 {dimension_numbers = #tpu.dot_dimension_numbers<[1], [0], [0], [1], [0, 0, 1, 1], [], []>} : vector<16x256xbf16>, vector<256x128xbf16>, vector<16x128xf32> -> vector<16x128xf32>
    %c0_15 = arith.constant 0 : index
    %c0_16 = arith.constant 0 : index
    %20 = vector.load %arg7[%c0_15, %c0_16] : memref<1x128xf32, #tpu.memory_space<vmem>>, vector<1x128xf32>
    %21 = vector.broadcast %20 : vector<1x128xf32> to vector<16x128xf32>
    %22 = arith.addf %19, %21 : vector<16x128xf32>
    %23 = math.tanh %22 : vector<16x128xf32>
    %24 = arith.truncf %23 : vector<16x128xf32> to vector<16x128xbf16>
    %c0_17 = arith.constant 0 : index
    %c0_18 = arith.constant 0 : index
    %25 = vector.load %arg8[%c0_17, %c0_18] : memref<16x128xbf16, #tpu.memory_space<vmem>>, vector<16x128xbf16>
    tpu.vector_store %arg8[%c0_17, %c0_18], %24 {strides = array<i32>} : memref<16x128xbf16, #tpu.memory_space<vmem>>, vector<16x128xbf16>,
    return
  }
  func.func @transform_0(%arg0: i32) -> (i32, i32) {
    %c0_i32 = arith.constant 0 : i32
    %c0_i32_0 = arith.constant 0 : i32
    return %arg0, %c0_i32 : i32, i32
  }
  func.func @transform_1(%arg0: i32) -> (i32, i32) {
    %c0_i32 = arith.constant 0 : i32
    %c0_i32_0 = arith.constant 0 : i32
    %c0_i32_1 = arith.constant 0 : i32
    return %c0_i32, %c0_i32_0 : i32, i32
  }
  func.func @transform_2(%arg0: i32) -> (i32, i32) {
    %c0_i32 = arith.constant 0 : i32
    %c0_i32_0 = arith.constant 0 : i32
    %c0_i32_1 = arith.constant 0 : i32
    return %c0_i32, %c0_i32_0 : i32, i32
  }
  func.func @transform_3(%arg0: i32) -> (i32, i32) {
    %c0_i32 = arith.constant 0 : i32
    %c0_i32_0 = arith.constant 0 : i32
    %c0_i32_1 = arith.constant 0 : i32
    return %c0_i32, %c0_i32_0 : i32, i32
  }
  func.func @transform_4(%arg0: i32) -> (i32, i32) {
    %c0_i32 = arith.constant 0 : i32
    %c0_i32_0 = arith.constant 0 : i32
    %c0_i32_1 = arith.constant 0 : i32
    return %c0_i32, %c0_i32_0 : i32, i32
  }
  func.func @transform_5(%arg0: i32) -> (i32, i32) {
    %c0_i32 = arith.constant 0 : i32
    %c0_i32_0 = arith.constant 0 : i32
    %c0_i32_1 = arith.constant 0 : i32
    return %c0_i32, %c0_i32_0 : i32, i32
  }
  func.func @transform_6(%arg0: i32) -> (i32, i32) {
    %c0_i32 = arith.constant 0 : i32
    %c0_i32_0 = arith.constant 0 : i32
    %c0_i32_1 = arith.constant 0 : i32
    return %c0_i32, %c0_i32_0 : i32, i32
  }
  func.func @transform_7(%arg0: i32) -> (i32, i32) {
    %c0_i32 = arith.constant 0 : i32
    %c0_i32_0 = arith.constant 0 : i32
    return %arg0, %c0_i32 : i32, i32
  }
}

</mosaic_0001>

<bundles_post_ra>
// kernel: generator_forward.1
= control target key start
LH: loop header
LB: loop body
LE: loop exit
PB: predicated region body
PF: predicated region fallthrough
CT: control target
= control target key end

     0   :  { %12 = vsyncpa [#allocation3], 0  ;;  %s1078_s0 = inlined_call_operand.hbm [shape: f32[16,100], index: 0, kind: input, shape index: {}]   ;;  %s1079_s1 = inlined_call_operand.hbm [shape: bf16[100,256], index: 1, kind: input, shape index: {}]   ;;  %s1080_s2 = inlined_call_operand.vmem [shape: f32[1,256], index: 2, kind: input, shape index: {}]   ;;  %s1081_s3 = inlined_call_operand.hbm [shape: bf16[256,256], index: 3, kind: input, shape index: {}]   ;;  %s1082_s4 = inlined_call_operand.vmem [shape: f32[1,256], index: 4, kind: input, shape index: {}]   ;;  %s1083_s5 = inlined_call_operand.hbm [shape: bf16[256,128], index: 5, kind: input, shape index: {}]   ;;  %s1084_s6 = inlined_call_operand.vmem [shape: f32[1,128], index: 6, kind: input, shape index: {}]   ;;  %s1085_s7 = inlined_call_operand.hbm [shape: bf16[16,128], index: 7, kind: output, shape index: {}]  }
   0x1   :  { %13 = vsyncpa [#allocation6], 0 }
   0x2   :  { %14 = vsyncpa [#allocation9], 0 }
   0x3   :  { %15 = vsyncpa [#allocation4], 0  ;;  %s998_s24 = smov [#allocation5]   ;;  %s999_s26 = smov [#allocation2]  }
   0x4   :  { %s33_s25 = sshll.u32 %s998_s24, 4  ;;  %s21_s27 = sshll.u32 %s999_s26, 4  ;;  %s34_s25 = int_to_ptr.vmem [resolvable:$true] %s33_s25  ;;  %s22_s27 = int_to_ptr.vmem [resolvable:$true] %s21_s27 }
   0x5   :  { %s898_s28 = scalar_lea.vmem %s34_s25, 1664  ;;  %p903_p1 = scmp.lt.s32.totalorder %s34_s25, %s34_s25 }
   0x6   :  { %p899_p0 = scmp.ne.s32.totalorder %s34_s25, %s898_s28  ;;  %p904_p2 = scmp.lt.s32.totalorder %s898_s28, %s898_s28 }
   0x8   :  { %p905_p3 = por %p904_p2, %p903_p1 }
   0xa   :  { %p906_p4 = pnand %p905_p3, %p899_p0 }
   0xc   :  { %909 = shalt.err (!%p906_p4)
}
   0xd   :  { %s1000_s29 = smov 128   ;;  %s1001_s30 = smov 8  }
   0xe   :  { %39 = dma.hbm_to_vmem [thread:$0]  %s1079_s1, 1664, %s34_s25, [#allocation6], %s1000_s29, %s1000_s29, %s1001_s30  }
   0xf   :  { %s918_s10 = scalar_lea.vmem %s22_s27, 256  ;;  %p923_p6 = scmp.lt.s32.totalorder %s22_s27, %s22_s27 }
  0x10   :  { %p919_p5 = scmp.ne.s32.totalorder %s22_s27, %s918_s10  ;;  %p924_p7 = scmp.lt.s32.totalorder %s918_s10, %s918_s10 }
  0x12   :  { %p925_p8 = por %p924_p7, %p923_p6 }
  0x14   :  { %p926_p9 = pnand %p925_p8, %p919_p5 }
  0x16   :  { %929 = shalt.err (!%p926_p9)
}
  0x17   :  { %27 = dma.hbm_to_vmem [thread:$0]  %s1078_s0, 256, %s22_s27, [#allocation3], %s1000_s29, %s1000_s29, %s1001_s30  }
  0x18   :  { %s1002_s13 = smov [#allocation7]   ;;  %s1003_s15 = smov [#allocation8]  }
  0x19   :  { %s47_s14 = sshll.u32 %s1002_s13, 4  ;;  %s61_s16 = sshll.u32 %s1003_s15, 4  ;;  %s48_s14 = int_to_ptr.vmem [resolvable:$true] %s47_s14  ;;  %s62_s16 = int_to_ptr.vmem [resolvable:$true] %s61_s16 }
  0x1a   :  { %s938_s17 = scalar_lea.vmem %s48_s14, 4096  ;;  %p943_p11 = scmp.lt.s32.totalorder %s48_s14, %s48_s14 }
  0x1b   :  { %p939_p10 = scmp.ne.s32.totalorder %s48_s14, %s938_s17  ;;  %p944_p12 = scmp.lt.s32.totalorder %s938_s17, %s938_s17 }
  0x1d   :  { %p945_p13 = por %p944_p12, %p943_p11 }
  0x1f   :  { %p946_p0 = pnand %p945_p13, %p939_p10 }
  0x21   :  { %949 = shalt.err (!%p946_p0)
}
  0x22   :  { %53 = dma.hbm_to_vmem [thread:$0]  %s1081_s3, 4096, %s48_s14, [#allocation6], %s1000_s29, %s1000_s29, %s1001_s30  }
  0x23   :  { %s958_s19 = scalar_lea.vmem %s62_s16, 2048  ;;  %p963_p2 = scmp.lt.s32.totalorder %s62_s16, %s62_s16 }
  0x24   :  { %p959_p1 = scmp.ne.s32.totalorder %s62_s16, %s958_s19  ;;  %p964_p3 = scmp.lt.s32.totalorder %s958_s19, %s958_s19 }
  0x26   :  { %p965_p4 = por %p964_p3, %p963_p2 }
  0x28   :  { %p966_p5 = pnand %p965_p4, %p959_p1 }
  0x2a   :  { %969 = shalt.err (!%p966_p5)
}
  0x2b   :  { %s1004_s0 = smov 64   ;;  %s1005_s20 = smov 4  }
  0x2c   :  { %67 = dma.hbm_to_vmem [thread:$0]  %s1083_s5, 2048, %s62_s16, [#allocation9], %s1004_s0, %s1004_s0, %s1005_s20  }
  0x2d   :  { %990 = dma.done.wait [#allocation3], 256  }
  0x2e   :  { %991 = vsyncadd [#allocation3], 4294967040 }
  0x2f   :  { %992 = dma.done.wait [#allocation6], 5760  }
  0x30   :  { %993 = vsyncadd [#allocation6], 4294961536 }
  0x31   :  { %994 = dma.done.wait [#allocation9], 2048  }
  0x32   :  { %995 = vsyncadd [#allocation9], 4294965248  ;;  %v1006_v0 = vmov 0   ;;  %v98_v1 = vld [vmem:[#allocation5 + $0x60] sm:$0x33]  ;;  %vm180_vm0 = vcmask 1041408   ;;  %v101_v62 = vlaneseq }
  0x33   :  { %219 = vmatprep.mubr.bf16.mxu0 %v1006_v0  ;;  %v709_v2 = vcombine.high %v98_v1, %v98_v1  ;;  %v708_v3 = vcombine.low %v98_v1, %v98_v1  ;;  %v804_v4 = vld [vmem:[#allocation5 + $0x54] ss:$8 sps:$4 sm:$0xff]   ;;  %v806_v6 = vld [vmem:[#allocation5 + $0x50] ss:$8 sps:$4 sm:$0xff]   ;;  %v807_v7 = vld [vmem:[#allocation5 + $0x44] ss:$8 sps:$4 sm:$0xff]  }
  0x34   :  { %v809_v8 = vld [vmem:[#allocation5 + $0x40] ss:$8 sps:$4 sm:$0xff]   ;;  %v810_v9 = vld [vmem:[#allocation5 + $0x34] ss:$8 sps:$4 sm:$0xff]   ;;  %v812_v12 = vld [vmem:[#allocation5 + $0x30] ss:$8 sps:$4 sm:$0xff]  }
  0x35   :  { %710 = vmatprep.subr.msk.bf16.mxu0 %vm180_vm0, %v709_v2  ;;  %v182_v5 = vsel %vm180_vm0, %v708_v3, 0  ;;  %v822_v10 = vld [vmem:[#allocation7 + $0x74] ss:$8 sps:$4 sm:$0xff]   ;;  %v824_v11 = vld [vmem:[#allocation7 + $0x70] ss:$8 sps:$4 sm:$0xff]   ;;  %v83_v26 = vld [vmem:[#allocation2] sm:$0xff] }
  0x36   :  { %190 = vmatpush1.bf16.msra.mxu0 %v182_v5  ;;  %440 = vmatprep.subr.bf16.mxu1 %v822_v10  ;;  %v825_v13 = vld [vmem:[#allocation7 + $0x64] ss:$8 sps:$4 sm:$0xff]   ;;  %v827_v15 = vld [vmem:[#allocation7 + $0x60] ss:$8 sps:$4 sm:$0xff]   ;;  %v828_v16 = vld [vmem:[#allocation7 + $0x54] ss:$8 sps:$4 sm:$0xff]  }
  0x37   :  { %191 = vmatprep.subr.bf16.mxu0 %v804_v4  ;;  %v813_v14 = vld [vmem:[#allocation5 + $0x24] ss:$8 sps:$4 sm:$0xff]   ;;  %441 = vmatpush1.bf16.msra.mxu1 %v824_v11  ;;  %v815_v17 = vld [vmem:[#allocation5 + $0x20] ss:$8 sps:$4 sm:$0xff]   ;;  %v816_v18 = vld [vmem:[#allocation5 + $0x14] ss:$8 sps:$4 sm:$0xff]  }
  0x38   :  { %442 = vmatprep.subr.bf16.mxu1 %v825_v13  ;;  %v830_v19 = vld [vmem:[#allocation7 + $0x50] ss:$8 sps:$4 sm:$0xff]   ;;  %v831_v20 = vld [vmem:[#allocation7 + $0x44] ss:$8 sps:$4 sm:$0xff]   ;;  %v833_v23 = vld [vmem:[#allocation7 + $0x40] ss:$8 sps:$4 sm:$0xff]  }
  0x39   :  { %v818_v21 = vld [vmem:[#allocation5 + $0x10] ss:$8 sps:$4 sm:$0xff]   ;;  %v819_v22 = vld [vmem:[#allocation5 + $0x4] ss:$8 sps:$4 sm:$0xff]   ;;  %v821_v25 = vld [vmem:[#allocation5] ss:$8 sps:$4 sm:$0xff]  }
  0x3a   :  { %192 = vmatpush1.bf16.msra.mxu0 %v806_v6  ;;  %v834_v24 = vld [vmem:[#allocation7 + $0x34] ss:$8 sps:$4 sm:$0xff]   ;;  %v836_v28 = vld [vmem:[#allocation7 + $0x30] ss:$8 sps:$4 sm:$0xff]   ;;  %v837_v29 = vld [vmem:[#allocation7 + $0x24] ss:$8 sps:$4 sm:$0xff]  }
  0x3b   :  { %193 = vmatprep.subr.bf16.mxu0 %v807_v7  ;;  %443 = vmatpush1.bf16.msra.mxu1 %v827_v15  ;;  %v84_v27 = vld [vmem:[#allocation2 + $0x8] sm:$0xff]  ;;  %v839_v30 = vld [vmem:[#allocation7 + $0x20] ss:$8 sps:$4 sm:$0xff]   ;;  %vm176_vm1 = vcmask 818176   ;;  %v843_v34 = vld [vmem:[#allocation7 + $0x4] ss:$8 sps:$4 sm:$0xff]  }
  0x3c   :  { %444 = vmatprep.subr.bf16.mxu1 %v828_v16  ;;  %v85_v31 = vpack.c.bf16 %v84_v27, %v83_v26  ;;  %v840_v32 = vld [vmem:[#allocation7 + $0x14] ss:$8 sps:$4 sm:$0xff]   ;;  %v842_v33 = vld [vmem:[#allocation7 + $0x10] ss:$8 sps:$4 sm:$0xff]   ;;  %v845_v35 = vld [vmem:[#allocation7] ss:$8 sps:$4 sm:$0xff]  }
  0x3d   :  { %v846_v36 = vld [vmem:[#allocation7 + $0xf4] ss:$8 sps:$4 sm:$0xff]   ;;  %v848_v37 = vld [vmem:[#allocation7 + $0xf0] ss:$8 sps:$4 sm:$0xff]   ;;  %v849_v38 = vld [vmem:[#allocation7 + $0xe4] ss:$8 sps:$4 sm:$0xff]  }
  0x3e   :  { %194 = vmatpush1.bf16.msra.mxu0 %v809_v8  ;;  %v851_v39 = vld [vmem:[#allocation7 + $0xe0] ss:$8 sps:$4 sm:$0xff]   ;;  %v852_v40 = vld [vmem:[#allocation7 + $0xd4] ss:$8 sps:$4 sm:$0xff]   ;;  %v854_v41 = vld [vmem:[#allocation7 + $0xd0] ss:$8 sps:$4 sm:$0xff]  }
  0x3f   :  { %195 = vmatprep.subr.bf16.mxu0 %v810_v9  ;;  %445 = vmatpush1.bf16.msra.mxu1 %v830_v19  ;;  %v855_v42 = vld [vmem:[#allocation7 + $0xc4] ss:$8 sps:$4 sm:$0xff]   ;;  %v857_v43 = vld [vmem:[#allocation7 + $0xc0] ss:$8 sps:$4 sm:$0xff]   ;;  %v858_v44 = vld [vmem:[#allocation7 + $0xb4] ss:$8 sps:$4 sm:$0xff]  }
  0x40   :  { %446 = vmatprep.subr.bf16.mxu1 %v831_v20  ;;  %v860_v45 = vld [vmem:[#allocation7 + $0xb0] ss:$8 sps:$4 sm:$0xff]   ;;  %v861_v46 = vld [vmem:[#allocation7 + $0xa4] ss:$8 sps:$4 sm:$0xff]   ;;  %v863_v47 = vld [vmem:[#allocation7 + $0xa0] ss:$8 sps:$4 sm:$0xff]  }
  0x41   :  { %v864_v48 = vld [vmem:[#allocation7 + $0x94] ss:$8 sps:$4 sm:$0xff]   ;;  %v866_v49 = vld [vmem:[#allocation7 + $0x90] ss:$8 sps:$4 sm:$0xff]   ;;  %v867_v50 = vld [vmem:[#allocation7 + $0x84] ss:$8 sps:$4 sm:$0xff]  }
  0x42   :  { %196 = vmatpush1.bf16.msra.mxu0 %v812_v12  ;;  %v869_v51 = vld [vmem:[#allocation7 + $0x80] ss:$8 sps:$4 sm:$0xff]   ;;  %v870_v52 = vld [vmem:[#allocation8 + $0x78] sm:$0xff]   ;;  %v872_v54 = vld [vmem:[#allocation8 + $0x70] sm:$0xff]   ;;  %v102_v63 = vshrl.u32 %v101_v62, 7  ;;  %s1007_s25 = smov [#allocation10]  }
  0x43   :  { %197 = vmatprep.subr.bf16.mxu0 %v813_v14  ;;  %447 = vmatpush1.bf16.msra.mxu1 %v833_v23  ;;  %v871_v53 = vld [vmem:[#allocation8 + $0x38] sm:$0xff]   ;;  %v873_v55 = vld [vmem:[#allocation8 + $0x30] sm:$0xff]   ;;  %v874_v56 = vld [vmem:[#allocation8 + $0x68] sm:$0xff]   ;;  %s682_s26 = sshll.u32 %s1007_s25, 4  ;;  %s683_s26 = int_to_ptr.vmem [resolvable:$true] %s682_s26 }
  0x44   :  { %448 = vmatprep.subr.bf16.mxu1 %v834_v24  ;;  %v875_v57 = vld [vmem:[#allocation8 + $0x28] sm:$0xff]   ;;  %v876_v58 = vld [vmem:[#allocation8 + $0x60] sm:$0xff]   ;;  %v878_v60 = vld [vmem:[#allocation8 + $0x58] sm:$0xff]   ;;  %v107_v0 = vsub.s32 1, %v102_v63  ;;  %v103_v1 = vsub.s32 0, %v102_v63  ;;  %s970_s27 = scalar_lea.vmem %s683_s26, 128  ;;  %p975_p7 = scmp.lt.s32.totalorder %s683_s26, %s683_s26 }
  0x45   :  { %v877_v59 = vld [vmem:[#allocation8 + $0x20] sm:$0xff]   ;;  %v879_v61 = vld [vmem:[#allocation8 + $0x18] sm:$0xff]   ;;  %v99_v2 = vld [vmem:[%s1080_s2] sm:$0x3]  ;;  %p971_p6 = scmp.ne.s32.totalorder %s683_s26, %s970_s27  ;;  %p976_p8 = scmp.lt.s32.totalorder %s970_s27, %s970_s27 }
  0x46   :  { %198 = vmatpush1.bf16.msra.mxu0 %v815_v17  ;;  %v108_v4 = vrot.slane %v99_v2, %v107_v0  ;;  %v104_v5 = vrot.slane %v99_v2, %v103_v1  ;;  %v880_v19 = vld [vmem:[#allocation8 + $0x50] sm:$0xff]   ;;  %v884_v23 = vld [vmem:[#allocation8 + $0x40] sm:$0xff]  }
  0x47   :  { %199 = vmatprep.subr.bf16.mxu0 %v816_v18  ;;  %449 = vmatpush1.bf16.msra.mxu1 %v836_v28  ;;  %v881_v20 = vld [vmem:[#allocation8 + $0x10] sm:$0xff]   ;;  %v885_v24 = vld [vmem:[#allocation8] sm:$0xff]   ;;  %p977_p9 = por %p976_p8, %p975_p7 }
  0x48   :  { %450 = vmatprep.subr.bf16.mxu1 %v837_v29 }
  0x49   :  { %p978_p10 = pnand %p977_p9, %p971_p6 }
  0x4a   :  { %200 = vmatpush1.bf16.msra.mxu0 %v818_v21  ;;  %v882_v21 = vld [vmem:[#allocation8 + $0x48] sm:$0xff]  }
  0x4b   :  { %201 = vmatprep.subr.bf16.mxu0 %v819_v22  ;;  %451 = vmatpush1.bf16.msra.mxu1 %v839_v30  ;;  %v883_v22 = vld [vmem:[#allocation8 + $0x8] sm:$0xff]  }
  0x4c   :  { %452 = vmatprep.subr.bf16.mxu1 %v840_v32 }
  0x4e   :  { %202 = vmatpush1.bf16.msra.mxu0 %v821_v25  ;;  %v268_v25 = vld [vmem:[%s1082_s4] sm:$0x3] }
  0x4f   :  { %453 = vmatpush1.bf16.msra.mxu1 %v842_v33  ;;  %770 = vmatprep.subr.bf16.mxu0 %v870_v52  ;;  %v277_v27 = vrot.slane %v268_v25, %v107_v0  ;;  %v273_v28 = vrot.slane %v268_v25, %v103_v1 }
  0x50   :  { %454 = vmatprep.subr.bf16.mxu1 %v843_v34 }
  0x51   :  { %711 = vmatmul.mubr.msk.bf16.vlgmr.msra.gmra.mxu0 %vm176_vm1, %v85_v31 }
  0x52   :  { %771 = vmatpush3.bf16.msra.mxu0 %v871_v53 }
  0x53   :  { %455 = vmatpush1.bf16.msra.mxu1 %v845_v35  ;;  %772 = vmatprep.subr.bf16.mxu0 %v872_v54 }
  0x54   :  { %456 = vmatprep.subr.bf16.mxu1 %v846_v36 }
  0x56   :  { %773 = vmatpush3.bf16.msra.mxu0 %v873_v55 }
  0x57   :  { %457 = vmatpush2.bf16.msra.mxu1 %v848_v37  ;;  %774 = vmatprep.subr.bf16.mxu0 %v874_v56 }
  0x58   :  { %458 = vmatprep.subr.bf16.mxu1 %v849_v38 }
  0x5a   :  { %775 = vmatpush3.bf16.msra.mxu0 %v875_v57 }
  0x5b   :  { %459 = vmatpush2.bf16.msra.mxu1 %v851_v39  ;;  %776 = vmatprep.subr.bf16.mxu0 %v876_v58 }
  0x5c   :  { %460 = vmatprep.subr.bf16.mxu1 %v852_v40 }
  0x5e   :  { %777 = vmatpush3.bf16.msra.mxu0 %v877_v59 }
  0x5f   :  { %461 = vmatpush2.bf16.msra.mxu1 %v854_v41  ;;  %778 = vmatprep.subr.bf16.mxu0 %v878_v60 }
  0x60   :  { %462 = vmatprep.subr.bf16.mxu1 %v855_v42 }
  0x62   :  { %779 = vmatpush3.bf16.msra.mxu0 %v879_v61 }
  0x63   :  { %463 = vmatpush2.bf16.msra.mxu1 %v857_v43  ;;  %780 = vmatprep.subr.bf16.mxu0 %v880_v19 }
  0x64   :  { %464 = vmatprep.subr.bf16.mxu1 %v858_v44  ;;  %v744_v44 = vld [vmem:[%s1084_s6] ss:$0 sm:$0xff] }
  0x66   :  { %781 = vmatpush3.bf16.msra.mxu0 %v881_v20 }
  0x67   :  { %465 = vmatpush2.bf16.msra.mxu1 %v860_v45  ;;  %782 = vmatprep.subr.bf16.mxu0 %v882_v21 }
  0x68   :  { %466 = vmatprep.subr.bf16.mxu1 %v861_v46 }
  0x6a   :  { %783 = vmatpush3.bf16.msra.mxu0 %v883_v22 }
  0x6b   :  { %467 = vmatpush2.bf16.msra.mxu1 %v863_v47  ;;  %784 = vmatprep.subr.bf16.mxu0 %v884_v23 }
  0x6c   :  { %468 = vmatprep.subr.bf16.mxu1 %v864_v48 }
  0x6e   :  { %785 = vmatpush3.bf16.msra.mxu0 %v885_v24 }
  0x6f   :  { %469 = vmatpush2.bf16.msra.mxu1 %v866_v49 }
  0x70   :  { %470 = vmatprep.subr.bf16.mxu1 %v867_v50 }
  0x73   :  { %471 = vmatpush2.bf16.msra.mxu1 %v869_v51 }
 0x111   :  { %v221_v3 = vpop.f32.mrf.mxu0 }
 0x112   :  { %v222_v10 = vadd.f32 %v221_v3, %v104_v5 }
 0x113   :  { %v223_v6 = vpop.f32.mrf.mxu0 }
 0x114   :  { %v224_v8 = vadd.f32 %v223_v6, %v108_v4  ;;  %v230_v16 = vmax.f32 %v222_v10, 0.0 }
 0x115   :  { %v225_v7 = vpop.f32.mrf.mxu0 }
 0x116   :  { %v226_v9 = vadd.f32 %v225_v7, %v104_v5  ;;  %v231_v14 = vmax.f32 %v224_v8, 0.0 }
 0x117   :  { %v227_v11 = vpop.f32.mrf.mxu0 }
 0x118   :  { %v228_v12 = vadd.f32 %v227_v11, %v108_v4  ;;  %v232_v13 = vmax.f32 %v226_v9, 0.0 }
 0x11a   :  { %v233_v15 = vmax.f32 %v228_v12, 0.0  ;;  %v234_v18 = vpack.c.bf16 %v232_v13, %v230_v16 }
 0x11c   :  { %v235_v17 = vpack.c.bf16 %v233_v15, %v231_v14 }
 0x11e   :  { %472 = vmatprep.mubr.bf16.mxu1 %v235_v17 }
 0x11f   :  { %473 = vmatmul.mubr.bf16.vlgmr.msra.gmra.mxu1 %v234_v18 }
 0x1df   :  { %v474_v26 = vpop.f32.mrf.mxu1 }
 0x1e0   :  { %v475_v33 = vadd.f32 %v474_v26, %v273_v28 }
 0x1e1   :  { %v476_v29 = vpop.f32.mrf.mxu1 }
 0x1e2   :  { %v477_v31 = vadd.f32 %v476_v29, %v277_v27  ;;  %v483_v39 = vmax.f32 %v475_v33, 0.0 }
 0x1e3   :  { %v478_v30 = vpop.f32.mrf.mxu1 }
 0x1e4   :  { %v479_v32 = vadd.f32 %v478_v30, %v273_v28  ;;  %v484_v37 = vmax.f32 %v477_v31, 0.0 }
 0x1e5   :  { %v480_v34 = vpop.f32.mrf.mxu1 }
 0x1e6   :  { %v481_v35 = vadd.f32 %v480_v34, %v277_v27  ;;  %v485_v36 = vmax.f32 %v479_v32, 0.0 }
 0x1e8   :  { %v486_v38 = vmax.f32 %v481_v35, 0.0  ;;  %v487_v41 = vpack.c.bf16 %v485_v36, %v483_v39 }
 0x1ea   :  { %v488_v40 = vpack.c.bf16 %v486_v38, %v484_v37 }
 0x1ec   :  { %656 = vmatprep.mubr.bf16.mxu0 %v488_v40 }
 0x1ed   :  { %657 = vmatmul.mubr.bf16.vlgmr.msra.gmra.mxu0 %v487_v41 }
 0x2ad   :  { %v786_v42 = vpop.f32.mrf.mxu0 }
 0x2af   :  { %v787_v43 = vpop.f32.mrf.mxu0 }
 0x2b0   :  { %v788_v45 = vadd.f32 %v787_v43, %v786_v42 }
 0x2b1   :  { %v789_v46 = vpop.f32.mrf.mxu0 }
 0x2b2   :  { %v659_v47 = vadd.f32 %v788_v45, %v744_v44 }
 0x2b3   :  { %v790_v48 = vpop.f32.mrf.mxu0 }
 0x2b4   :  { %v791_v49 = vadd.f32 %v790_v48, %v789_v46  ;;  %886 = vtanh.f32 %v659_v47 }
 0x2b6   :  { %v662_v50 = vadd.f32 %v791_v49, %v744_v44 }
 0x2b8   :  { %888 = vtanh.f32 %v662_v50 }
 0x2c1   :  { %v887_v51 = vpop.eup %886 }
 0x2c5   :  { %v889_v52 = vpop.eup %888 }
 0x2c6   :  { %v768_v53 = vpack.c.bf16 %v889_v52, %v887_v51 }
 0x2c8   :  { %769 = vst [vmem:[#allocation10] sm:$0xff] %v768_v53  }
 0x2c9   :  { %981 = shalt.err (!%p978_p10)
}
 0x2ca   :  { %688 = dma.vmem_to_hbm [thread:$0]  %s683_s26, 128, %s1085_s7, [#allocation4], %s1004_s0, %s1004_s0, %s1005_s20  }
 0x2cb   :  { %996 = dma.done.wait [#allocation4], 128  }
 0x2cc   :  { %997 = vsyncadd [#allocation4], 4294967168 }
 0x2cd   :  { %692 = vsyncpa [#allocation3], 1 }
 0x2ce   :  { %693 = vsyncpa [#allocation6], 1 }
 0x2cf   :  { %694 = vsyncpa [#allocation9], 1 }
 0x2d0   :  { %695 = vsyncpa [#allocation4], 1 }

</bundles_post_ra>
